<compile_context>
chip_gen: v5e
topology: v5e:2x2
jax: 0.10.0
libtpu: 0.0.40
codegen_flags: <defaults>
</compile_context>

<pallas_src>
import functools

import jax
import jax.numpy as jnp
from jax import lax
from jax.experimental import pallas as pl
from jax.experimental.pallas import tpu as pltpu

EPS = 1e-5


# --------------------------- roll-direction probe ---------------------------

@functools.cache
def _roll_matches_jnp() -> bool:
    """Pin down pltpu.roll's rotation direction with one tiny probe kernel.

    Returns True if pltpu.roll follows the jnp.roll convention
    (out[..., i] = x[..., i - shift]); the main kernel bakes static shift
    amounts accordingly, so correctness never depends on the convention.
    """
    def probe(x_ref, o_ref):
        o_ref[...] = pltpu.roll(x_ref[...], 1, axis=1)

    x = jnp.tile(jnp.arange(128, dtype=jnp.float32), (8, 1))
    y = pl.pallas_call(probe, out_shape=jax.ShapeDtypeStruct((8, 128), jnp.float32))(x)
    return float(y[0, 1]) == 0.0


def _tap_roll_amounts(H, W):
    """Static lane-roll amount per 3x3 tap so that out[i] reads h[i + dy*W + dx]."""
    HW = H * W
    sign = -1 if _roll_matches_jnp() else 1
    rolls = []
    for dy in (-1, 0, 1):
        for dx in (-1, 0, 1):
            s = dy * W + dx
            rolls.append(0 if s == 0 else (sign * s) % HW)
    return tuple(rolls)


def _make_tap_masks(H, W):
    """(9, 1, H*W) f32 validity masks for the 3x3 taps under zero padding."""
    HW = H * W
    idx = jnp.arange(HW)
    r, c = idx // W, idx % W
    masks = []
    for dy in (-1, 0, 1):
        for dx in (-1, 0, 1):
            valid = (r + dy >= 0) & (r + dy < H) & (c + dx >= 0) & (c + dx < W)
            masks.append(valid.astype(jnp.float32))
    return jnp.stack(masks).reshape(9, 1, HW)


# ------------------------------ Pallas kernel -------------------------------

def _std_block_body(x_ref, mask_ref, wsq_ref, bsq_ref, dww_ref, dwb_ref,
                    wrs_ref, brs_ref, wex_ref, bex_ref, o_ref,
                    *, tap_rolls, num_dw_layers):
    """One image per grid step; all activations laid out as (C, H*W)."""
    x = x_ref[0]                                              # (Cin, HW)

    # --- squeeze: 1x1 conv (BN folded) + ReLU -- small MXU matmul, f32 acc ---
    h = jnp.dot(wsq_ref[...], x, preferred_element_type=jnp.float32)
    h = jnp.maximum(h + bsq_ref[...], 0.0)                    # (Cmid, HW)

    # Hoist the (tiny) DW weights / biases out of the tap loops.
    dww = dww_ref[...]                                        # (Cmid, 9*L)
    dwb = dwb_ref[...]                                        # (Cmid, L)

    # --- depthwise 3x3 + BN + ReLU stack ---
    #   out[:, i] = sum_t w[:, t] * h[:, i + s_t] * valid_t[i]
    # Lane-axis roll (XLU) brings h[i + s_t] into lane i; wrapped / cross-row
    # positions are zeroed by the precomputed boundary mask (VPU MAC only).
    for l in range(num_dw_layers):                            # static unroll
        acc = None
        for t in range(9):                                    # 3x3 taps
            k = l * 9 + t
            w_t = dww[:, k:k + 1]                             # (Cmid, 1)
            if tap_rolls[t] == 0:                             # center tap: no roll/mask
                term = h * w_t
            else:
                shifted = pltpu.roll(h, tap_rolls[t], axis=1)
                term = shifted * mask_ref[t] * w_t
            acc = term if acc is None else acc + term
        h = jnp.maximum(acc + dwb[:, l:l + 1], 0.0)

    # --- restore: 1x1 conv + BN (no ReLU) ---
    out = jnp.dot(wrs_ref[...], h, preferred_element_type=jnp.float32) + brs_ref[...]

    # --- identity branch: expand 1x1+BN, or plain residual when shapes match ---
    if wex_ref is not None:
        out = out + jnp.dot(wex_ref[...], x, preferred_element_type=jnp.float32)
        out = out + bex_ref[...]
    else:
        out = out + x                                         # statically skipped matmul

    # Lane-dense store: last dim H*W is a multiple of 128 -> unmasked vst.
    o_ref[0] = jnp.maximum(out, 0.0)


def _make_kernel(tap_rolls, num_dw_layers, has_expand):
    if has_expand:
        def kernel(x_ref, mask_ref, wsq, bsq, dww, dwb, wrs, brs, wex, bex, o_ref):
            _std_block_body(x_ref, mask_ref, wsq, bsq, dww, dwb, wrs, brs, wex, bex,
                            o_ref, tap_rolls=tap_rolls, num_dw_layers=num_dw_layers)
    else:
        def kernel(x_ref, mask_ref, wsq, bsq, dww, dwb, wrs, brs, o_ref):
            _std_block_body(x_ref, mask_ref, wsq, bsq, dww, dwb, wrs, brs, None, None,
                            o_ref, tap_rolls=tap_rolls, num_dw_layers=num_dw_layers)
    return kernel


def std_block_pallas(x_nchw, folded):
    N, Cin, H, W = x_nchw.shape
    HW = H * W
    wsq, bsq, dww, dwb, wrs, brs, wex, bex = folded
    Cout = wrs.shape[0]
    num_dw_layers = dwb.shape[1]
    has_expand = wex is not None

    # NCHW -> (N, C, H*W): pure reshape (channels on sublanes, spatial on lanes).
    x2 = x_nchw.reshape(N, Cin, HW)
    masks = _make_tap_masks(H, W)
    tap_rolls = _tap_roll_amounts(H, W)

    kernel = _make_kernel(tap_rolls, num_dw_layers, has_expand)

    weights = [wsq, bsq, dww, dwb, wrs, brs]
    if has_expand:
        weights += [wex, bex]

    def const_spec(arr):                  # whole array, same block every grid step
        return pl.BlockSpec(arr.shape, lambda n, _nd=arr.ndim: (0,) * _nd)

    out = pl.pallas_call(
        kernel,
        out_shape=jax.ShapeDtypeStruct((N, Cout, HW), jnp.float32),
        grid_spec=pltpu.PrefetchScalarGridSpec(
            num_scalar_prefetch=0,
            grid=(N,),
            in_specs=[pl.BlockSpec((1, Cin, HW), lambda n: (n, 0, 0)),
                      const_spec(masks)] + [const_spec(w) for w in weights],
            out_specs=pl.BlockSpec((1, Cout, HW), lambda n: (n, 0, 0)),
        ),
        compiler_params=pltpu.CompilerParams(
            dimension_semantics=("parallel",),      # shard batch across TCs (v7x)
            vmem_limit_bytes=32 * 1024 * 1024,      # explicit, generation-safe budget
        ),
    )(x2, masks, *weights)

    # (N, Cout, H*W) -> NCHW: pure reshape.
    return out.reshape(N, Cout, H, W)


# ------------------------ parameters (deterministic) ------------------------

def make_params(key, in_planes, out_planes, k1, k2, reduction=4):
    mid = out_planes // reduction
    keys = jax.random.split(key, 16)

    def bn_params(k, c):
        ka, kb, kc, kd = jax.random.split(k, 4)
        return dict(gamma=jax.random.uniform(ka, (c,), minval=0.5, maxval=1.5),
                    beta=jax.random.normal(kb, (c,)) * 0.1,
                    mean=jax.random.normal(kc, (c,)) * 0.1,
                    var=jax.random.uniform(kd, (c,), minval=0.5, maxval=1.5))

    p = {}
    p['sq_w'] = jax.random.normal(keys[0], (mid, in_planes, 1, 1)) * 0.3
    p['sq_bn'] = bn_params(keys[1], mid)
    num_dw = k1 // 2 + k2 // 2
    p['dw'] = []
    for i in range(num_dw):
        w = jax.random.normal(keys[2 + i], (mid, 1, 3, 3)) * 0.3
        p['dw'].append((w, bn_params(keys[8 + i], mid)))
    p['rs_w'] = jax.random.normal(keys[12], (out_planes, mid, 1, 1)) * 0.3
    p['rs_bn'] = bn_params(keys[13], out_planes)
    if in_planes != out_planes:
        p['ex_w'] = jax.random.normal(keys[14], (out_planes, in_planes, 1, 1)) * 0.3
        p['ex_bn'] = bn_params(keys[15], out_planes)
    else:
        p['ex_w'] = None
        p['ex_bn'] = None
    return p


def _fold_bn(bnp):
    s = bnp['gamma'] / jnp.sqrt(bnp['var'] + EPS)
    b = bnp['beta'] - bnp['mean'] * s
    return s, b


def fold_params(p):
    """Fold inference BN into conv weights/biases, laid out for (C, HW) blocks."""
    s, b = _fold_bn(p['sq_bn'])
    wsq = p['sq_w'][:, :, 0, 0] * s[:, None]                    # (Cmid, Cin)
    bsq = b[:, None]                                            # (Cmid, 1)

    dww_cols, dwb_cols = [], []
    for (w, bnp) in p['dw']:
        s, b = _fold_bn(bnp)
        dww_cols.append(w[:, 0, :, :].reshape(w.shape[0], 9) * s[:, None])  # (Cmid, 9)
        dwb_cols.append(b[:, None])                                         # (Cmid, 1)
    dww = jnp.concatenate(dww_cols, axis=1)                     # (Cmid, 9*L), col = 9*l + t
    dwb = jnp.concatenate(dwb_cols, axis=1)                     # (Cmid, L)

    s, b = _fold_bn(p['rs_bn'])
    wrs = p['rs_w'][:, :, 0, 0] * s[:, None]                    # (Cout, Cmid)
    brs = b[:, None]                                            # (Cout, 1)

    if p['ex_w'] is not None:
        s, b = _fold_bn(p['ex_bn'])
        wex = p['ex_w'][:, :, 0, 0] * s[:, None]                # (Cout, Cin)
        bex = b[:, None]                                        # (Cout, 1)
    else:
        wex, bex = None, None                                   # identity matmul skipped
    return wsq, bsq, dww, dwb, wrs, brs, wex, bex


# ------------------------------ JAX reference -------------------------------

def ref_forward(x, p):
    def bn(y, bnp):
        s = bnp['gamma'] / jnp.sqrt(bnp['var'] + EPS)
        b = bnp['beta'] - bnp['mean'] * s
        return y * s[None, :, None, None] + b[None, :, None, None]

    def conv1x1(y, w):
        return lax.conv_general_dilated(y, w, (1, 1), 'VALID',
                                        dimension_numbers=('NCHW', 'OIHW', 'NCHW'))

    def dwconv(y, w):
        return lax.conv_general_dilated(y, w, (1, 1), ((1, 1), (1, 1)),
                                        feature_group_count=y.shape[1],
                                        dimension_numbers=('NCHW', 'OIHW', 'NCHW'))

    h = jax.nn.relu(bn(conv1x1(x, p['sq_w']), p['sq_bn']))
    for (w, bnp) in p['dw']:
        h = jax.nn.relu(bn(dwconv(h, w), bnp))
    r = bn(conv1x1(h, p['rs_w']), p['rs_bn'])
    ident = bn(conv1x1(x, p['ex_w']), p['ex_bn']) if p['ex_w'] is not None else x
    return jax.nn.relu(r + ident)


# ---------------------------------- main ------------------------------------

if __name__ == "__main__":
    key = jax.random.PRNGKey(0)
    kx, kp, kx2, kp2 = jax.random.split(key, 4)

    # Config 1: in_planes != out_planes (expand branch active).
    N, Cin, H, W = 2, 4, 16, 16
    Cout, k1, k2, reduction = 16, 3, 5, 4        # mid = 4, DW layers = 1 + 2 = 3
    x = jax.random.normal(kx, (N, Cin, H, W), jnp.float32)   # NCHW like PyTorch
    params = make_params(kp, Cin, Cout, k1, k2, reduction)
    y = jax.block_until_ready(std_block_pallas(x, fold_params(params)))
    err = float(jnp.max(jnp.abs(y - ref_forward(x, params))))
    assert err < 1e-3, f"expand-variant mismatch, max abs err = {err}"

    # Config 2: in_planes == out_planes (identity matmul statically skipped).
    x2 = jax.random.normal(kx2, (N, Cout, H, W), jnp.float32)
    params2 = make_params(kp2, Cout, Cout, 3, 3, reduction)  # mid = 4, DW layers = 2
    y2 = jax.block_until_ready(std_block_pallas(x2, fold_params(params2)))
    err2 = float(jnp.max(jnp.abs(y2 - ref_forward(x2, params2))))
    assert err2 < 1e-3, f"no-expand-variant mismatch, max abs err = {err2}"

    print("KERNEL_OK")
</pallas_src>

<mosaic_0001>
module attributes {stable_mosaic.version = 11 : i64} {
  func.func @probe(%arg0: memref<8x128xf32, #tpu.memory_space<vmem>>, %arg1: memref<8x128xf32, #tpu.memory_space<vmem>>) attributes {dimension_semantics = [], scalar_prefetch = 0 : i64, scratch_operands = 0 : i64, tpu.core_type = #tpu.core_type<tc>} {
    %c0 = arith.constant 0 : index
    %c0_0 = arith.constant 0 : index
    %0 = vector.load %arg0[%c0, %c0_0] : memref<8x128xf32, #tpu.memory_space<vmem>>, vector<8x128xf32>
    %c1_i32 = arith.constant 1 : i32
    %1 = tpu.dynamic_rotate %0 by %c1_i32 dim 1 : vector<8x128xf32>, i32 -> vector<8x128xf32>
    %c0_1 = arith.constant 0 : index
    %c0_2 = arith.constant 0 : index
    %2 = vector.load %arg1[%c0_1, %c0_2] : memref<8x128xf32, #tpu.memory_space<vmem>>, vector<8x128xf32>
    tpu.vector_store %arg1[%c0_1, %c0_2], %1 {strides = array<i32>} : memref<8x128xf32, #tpu.memory_space<vmem>>, vector<8x128xf32>,
    return
  }
}

</mosaic_0001>

<bundles_post_ra>
// kernel: tpu_custom_call.1
= control target key start
LH: loop header
LB: loop body
LE: loop exit
PB: predicated region body
PF: predicated region fallthrough
CT: control target
= control target key end

     0   :  { %6 = vsyncpa [#allocation3], 0  ;;  %s118_s0 = inlined_call_operand.hbm [shape: f32[8,128], index: 0, kind: input, shape index: {}]   ;;  %s119_s1 = inlined_call_operand.hbm [shape: f32[8,128], index: 1, kind: output, shape index: {}]  }
   0x1   :  { %7 = vsyncpa [#allocation4], 0  ;;  %s13_s8 = sshll.u32 %s118_s0, 4  ;;  %s99_s9 = smov [#allocation2]   ;;  %s14_s8 = int_to_ptr.hbm [resolvable:$true] %s13_s8 }
   0x2   :  { %s15_s10 = sshll.u32 %s99_s9, 4  ;;  %s16_s10 = int_to_ptr.vmem [resolvable:$true] %s15_s10 }
   0x3   :  { %18 = dma.hbm_to_vmem [thread:$0]  %s14_s8, 128, %s16_s10, [#allocation3]  }
   0x4   :  { %95 = dma.done.wait [#allocation3], 128  }
   0x5   :  { %96 = vsyncadd [#allocation3], 4294967168  ;;  %v23_v0 = vld [vmem:[#allocation2] sm:$0xff]  ;;  %s100_s11 = smov 1   ;;  %s101_s12 = smov [#allocation5]  }
   0x6   :  { %24 = vrot.lane.b32.xlu0 %v23_v0, %s100_s11  ;;  %s32_s13 = sshll.u32 %s101_s12, 4  ;;  %s34_s16 = sshll.u32 %s119_s1, 4  ;;  %s33_s13 = int_to_ptr.vmem [resolvable:$true] %s32_s13  ;;  %s35_s16 = int_to_ptr.hbm [resolvable:$true] %s34_s16 }
  0x78   :  { %v25_v1 = vpop.permute.xlu0 %24 }
  0x79   :  { %26 = vst [vmem:[#allocation5] sm:$0xff] %v25_v1 }
  0x7a   :  { %37 = dma.vmem_to_hbm [thread:$0]  %s33_s13, 128, %s35_s16, [#allocation4]  }
  0x7b   :  { %97 = dma.done.wait [#allocation4], 128  }
  0x7c   :  { %98 = vsyncadd [#allocation4], 4294967168 }
  0x7d   :  { %42 = vsyncpa [#allocation3], 1 }
  0x7e   :  { %43 = vsyncpa [#allocation4], 1 }

</bundles_post_ra>
